<compile_context>
chip_gen: v5e
topology: v5e:2x2
jax: 0.10.0
libtpu: 0.0.40
codegen_flags: <defaults>
</compile_context>

<pallas_src>
import math

import jax
import jax.numpy as jnp
from jax.experimental import pallas as pl
from jax.experimental.pallas import tpu as pltpu

_LANES = 128
_SUBLANES = 8
_TILE_ROWS = 1024  # (1024, 128) f32 tile = 512 KiB; 2 inputs x 2 bufs = 2 MiB.


# ---------------------------------------------------------------------------
# Kernels: per-block partial reductions. Each grid step writes an (8, 128)
# partial tile (VPU adds only); the final reduce happens in JAX glue.
# ---------------------------------------------------------------------------
def _make_sqerr_kernel(nvalid, need_mask):
    """Partial sum of (x - t)^2 over a (TILE_ROWS, 128) block."""

    def kernel(x_ref, t_ref, out_ref):
        tr = x_ref.shape[0]
        x = x_ref[...].astype(jnp.float32)
        t = t_ref[...].astype(jnp.float32)
        d = x - t
        if need_mask:
            # Global element index of each lane of this block (int32 is fine
            # for < 2^31 elements; typical compression tensors are far below).
            i = pl.program_id(0)
            row = jax.lax.broadcasted_iota(jnp.int32, (tr, _LANES), 0)
            lane = jax.lax.broadcasted_iota(jnp.int32, (tr, _LANES), 1)
            gidx = (i * tr + row) * _LANES + lane
            d = jnp.where(gidx < nvalid, d, 0.0)
        sq = d * d
        # Fold the tile into a single (8, 128) vreg with VPU adds only.
        out_ref[...] = jnp.sum(sq.reshape(tr // _SUBLANES, _SUBLANES, _LANES),
                               axis=0)

    return kernel


def _make_log_kernel(nvalid, need_mask):
    """Partial sum of log(y) over a (TILE_ROWS, 128) block."""

    def kernel(y_ref, out_ref):
        tr = y_ref.shape[0]
        y = y_ref[...].astype(jnp.float32)
        if need_mask:
            i = pl.program_id(0)
            row = jax.lax.broadcasted_iota(jnp.int32, (tr, _LANES), 0)
            lane = jax.lax.broadcasted_iota(jnp.int32, (tr, _LANES), 1)
            gidx = (i * tr + row) * _LANES + lane
            y = jnp.where(gidx < nvalid, y, 1.0)  # log(1) = 0 -> neutral
        lg = jnp.log(y)
        out_ref[...] = jnp.sum(lg.reshape(tr // _SUBLANES, _SUBLANES, _LANES),
                               axis=0)

    return kernel


# ---------------------------------------------------------------------------
# Wrappers
# ---------------------------------------------------------------------------
def _to_slab(x):
    """Flatten to a lane-dense (rows, 128) slab with rows % 8 == 0.

    Zero-copy (pure reshape) when numel is a multiple of 8*128; otherwise a
    small pad copy is taken for the ragged tail (masked in-kernel anyway).
    """
    flat = jnp.reshape(x, (-1,))
    n = flat.shape[0]
    chunk = _SUBLANES * _LANES
    if n % chunk != 0:
        # TODO(synk): rare copy path for numel not a multiple of 1024; the
        # common production shapes take the zero-copy reshape path.
        flat = jnp.pad(flat, (0, chunk - n % chunk))
    return flat.reshape(-1, _LANES), n


def _tiling(rows):
    tr = min(_TILE_ROWS, rows)          # rows is always a multiple of 8
    nblocks = pl.cdiv(rows, tr)
    return tr, nblocks


def _sum_sq_error(x_hat, target):
    xs, n = _to_slab(x_hat)
    ts, _ = _to_slab(target)
    rows = xs.shape[0]
    tr, nblocks = _tiling(rows)
    need_mask = (nblocks * tr * _LANES) != n
    partials = pl.pallas_call(
        _make_sqerr_kernel(n, need_mask),
        out_shape=jax.ShapeDtypeStruct((nblocks * _SUBLANES, _LANES),
                                       jnp.float32),
        grid=(nblocks,),
        in_specs=[
            pl.BlockSpec((tr, _LANES), lambda i: (i, 0)),
            pl.BlockSpec((tr, _LANES), lambda i: (i, 0)),
        ],
        out_specs=pl.BlockSpec((_SUBLANES, _LANES), lambda i: (i, 0)),
        compiler_params=pltpu.CompilerParams(
            dimension_semantics=("parallel",)),
    )(xs, ts)
    return jnp.sum(partials)


def _sum_log(lik):
    ls, n = _to_slab(lik)
    rows = ls.shape[0]
    tr, nblocks = _tiling(rows)
    need_mask = (nblocks * tr * _LANES) != n
    partials = pl.pallas_call(
        _make_log_kernel(n, need_mask),
        out_shape=jax.ShapeDtypeStruct((nblocks * _SUBLANES, _LANES),
                                       jnp.float32),
        grid=(nblocks,),
        in_specs=[pl.BlockSpec((tr, _LANES), lambda i: (i, 0))],
        out_specs=pl.BlockSpec((_SUBLANES, _LANES), lambda i: (i, 0)),
        compiler_params=pltpu.CompilerParams(
            dimension_semantics=("parallel",)),
    )(ls)
    return jnp.sum(partials)


def rate_distortion_loss(x_hat, target, likelihoods_y, likelihoods_z,
                         lmbda=0.01):
    """Pallas-backed equivalent of RateDistortionLoss.forward.

    output['likelihoods'] is modeled as {'y': likelihoods_y, 'z': likelihoods_z}
    (each a single tensor; iterating a tensor in the PyTorch code just splits
    it along dim 0, which sums to the same total log-likelihood).
    """
    N, C, H, W = target.shape
    num_pixels = N * H * W
    numel = N * C * H * W

    sum_sq = _sum_sq_error(x_hat, target)
    sum_log_y = _sum_log(likelihoods_y)
    sum_log_z = _sum_log(likelihoods_z)

    scale = 1.0 / (-math.log(2.0) * num_pixels)
    y_bpp = sum_log_y * scale
    z_bpp = sum_log_z * scale
    bpp = y_bpp + z_bpp

    mse = (sum_sq / numel) * (255.0 ** 2)
    loss = lmbda * mse + bpp

    return {
        "bpp_loss": bpp,
        "y_bpp_loss": y_bpp,
        "z_bpp_loss": z_bpp,
        "mse_loss": mse,
        "loss": loss,
    }


def _reference(x_hat, target, lik_y, lik_z, lmbda=0.01):
    """Pure-JAX reference mirroring the PyTorch forward."""
    N, C, H, W = target.shape
    num_pixels = N * H * W
    y_bpp = jnp.sum(jnp.log(lik_y)) / (-math.log(2.0) * num_pixels)
    z_bpp = jnp.sum(jnp.log(lik_z)) / (-math.log(2.0) * num_pixels)
    bpp = y_bpp + z_bpp
    mse = jnp.mean((x_hat - target) ** 2) * 255.0 ** 2
    loss = lmbda * mse + bpp
    return {"bpp_loss": bpp, "y_bpp_loss": y_bpp, "z_bpp_loss": z_bpp,
            "mse_loss": mse, "loss": loss}


if __name__ == "__main__":
    key = jax.random.PRNGKey(0)
    k1, k2, k3, k4 = jax.random.split(key, 4)

    # Small shapes consistent with an image-compression model output:
    # target/x_hat NCHW, y/z latent likelihoods in (0, 1].
    target = jax.random.uniform(k1, (2, 4, 16, 16), dtype=jnp.float32)
    x_hat = target + 0.05 * jax.random.normal(k2, (2, 4, 16, 16),
                                              dtype=jnp.float32)
    lik_y = jax.random.uniform(k3, (2, 8, 4, 4), minval=0.01, maxval=1.0,
                               dtype=jnp.float32)
    lik_z = jax.random.uniform(k4, (2, 8, 2, 2), minval=0.01, maxval=1.0,
                               dtype=jnp.float32)

    out = rate_distortion_loss(x_hat, target, lik_y, lik_z, lmbda=0.01)
    out = jax.tree_util.tree_map(jax.block_until_ready, out)

    ref = _reference(x_hat, target, lik_y, lik_z, lmbda=0.01)
    for k in ("bpp_loss", "y_bpp_loss", "z_bpp_loss", "mse_loss", "loss"):
        assert jnp.allclose(out[k], ref[k], rtol=1e-5, atol=1e-5), (
            k, out[k], ref[k])

    print("KERNEL_OK")
</pallas_src>

<mosaic_0001>
module attributes {stable_mosaic.version = 11 : i64} {
  func.func @kernel(%arg0: i32, %arg1: memref<16x128xf32, #tpu.memory_space<vmem>>, %arg2: memref<16x128xf32, #tpu.memory_space<vmem>>, %arg3: memref<8x128xf32, #tpu.memory_space<vmem>>) attributes {dimension_semantics = [#tpu.dimension_semantics<parallel>], iteration_bounds = array<i64: 1>, scalar_prefetch = 0 : i64, scratch_operands = 0 : i64, tpu.core_type = #tpu.core_type<tc>, window_params = [{transform_indices = @transform_0, window_bounds = array<i64: 16, 128>}, {transform_indices = @transform_1, window_bounds = array<i64: 16, 128>}, {transform_indices = @transform_2, window_bounds = array<i64: 8, 128>}]} {
    %c0 = arith.constant 0 : index
    %c0_0 = arith.constant 0 : index
    %0 = vector.load %arg1[%c0, %c0_0] : memref<16x128xf32, #tpu.memory_space<vmem>>, vector<16x128xf32>
    %c0_1 = arith.constant 0 : index
    %c0_2 = arith.constant 0 : index
    %1 = vector.load %arg2[%c0_1, %c0_2] : memref<16x128xf32, #tpu.memory_space<vmem>>, vector<16x128xf32>
    %2 = arith.subf %0, %1 : vector<16x128xf32>
    %3 = arith.mulf %2, %2 : vector<16x128xf32>
    %4 = vector.shape_cast %3 : vector<16x128xf32> to vector<2x8x128xf32>
    %cst = arith.constant dense<0.000000e+00> : vector<8x128xf32>
    %5 = vector.multi_reduction <add>, %4, %cst [0] : vector<2x8x128xf32> to vector<8x128xf32>
    %c0_3 = arith.constant 0 : index
    %c0_4 = arith.constant 0 : index
    %6 = vector.load %arg3[%c0_3, %c0_4] : memref<8x128xf32, #tpu.memory_space<vmem>>, vector<8x128xf32>
    tpu.vector_store %arg3[%c0_3, %c0_4], %5 {strides = array<i32>} : memref<8x128xf32, #tpu.memory_space<vmem>>, vector<8x128xf32>,
    return
  }
  func.func @transform_0(%arg0: i32) -> (i32, i32) {
    %c0_i32 = arith.constant 0 : i32
    %c0_i32_0 = arith.constant 0 : i32
    return %arg0, %c0_i32 : i32, i32
  }
  func.func @transform_1(%arg0: i32) -> (i32, i32) {
    %c0_i32 = arith.constant 0 : i32
    %c0_i32_0 = arith.constant 0 : i32
    return %arg0, %c0_i32 : i32, i32
  }
  func.func @transform_2(%arg0: i32) -> (i32, i32) {
    %c0_i32 = arith.constant 0 : i32
    %c0_i32_0 = arith.constant 0 : i32
    return %arg0, %c0_i32 : i32, i32
  }
}

</mosaic_0001>

<bundles_post_ra>
// kernel: tpu_custom_call.1
= control target key start
LH: loop header
LB: loop body
LE: loop exit
PB: predicated region body
PF: predicated region fallthrough
CT: control target
= control target key end

     0   :  { %7 = vsyncpa [#allocation3], 0  ;;  %s184_s0 = inlined_call_operand.hbm [shape: f32[16,128], index: 0, kind: input, shape index: {}]   ;;  %s185_s1 = inlined_call_operand.hbm [shape: f32[16,128], index: 1, kind: input, shape index: {}]   ;;  %s186_s2 = inlined_call_operand.hbm [shape: f32[8,128], index: 2, kind: output, shape index: {}]  }
   0x1   :  { %8 = vsyncpa [#allocation6], 0 }
   0x2   :  { %9 = vsyncpa [#allocation4], 0  ;;  %s14_s11 = sshll.u32 %s184_s0, 4  ;;  %s155_s12 = smov [#allocation2]   ;;  %s15_s11 = int_to_ptr.hbm [resolvable:$true] %s14_s11 }
   0x3   :  { %s16_s13 = sshll.u32 %s155_s12, 4  ;;  %s27_s16 = sshll.u32 %s185_s1, 4  ;;  %s17_s13 = int_to_ptr.vmem [resolvable:$true] %s16_s13  ;;  %s28_s16 = int_to_ptr.hbm [resolvable:$true] %s27_s16 }
   0x4   :  { %s156_s17 = smov 128   ;;  %s157_s18 = smov 8  }
   0x5   :  { %22 = dma.hbm_to_vmem [thread:$0]  %s15_s11, 256, %s17_s13, [#allocation3], %s156_s17, %s156_s17, %s157_s18  }
   0x6   :  { %s158_s19 = smov [#allocation5]  }
   0x7   :  { %s29_s20 = sshll.u32 %s158_s19, 4  ;;  %s30_s20 = int_to_ptr.vmem [resolvable:$true] %s29_s20 }
   0x8   :  { %35 = dma.hbm_to_vmem [thread:$0]  %s28_s16, 256, %s30_s20, [#allocation6], %s156_s17, %s156_s17, %s157_s18  }
   0x9   :  { %149 = dma.done.wait [#allocation3], 256  }
   0xa   :  { %150 = vsyncadd [#allocation3], 4294967040 }
   0xb   :  { %151 = dma.done.wait [#allocation6], 256  }
   0xc   :  { %152 = vsyncadd [#allocation6], 4294967040  ;;  %v44_v0 = vld [vmem:[#allocation2] sm:$0xff]  ;;  %v45_v1 = vld [vmem:[#allocation2 + $0x8] sm:$0xff]  ;;  %s159_s0 = smov [#allocation7]   ;;  %s61_s23 = sshll.u32 %s186_s2, 4  ;;  %s62_s23 = int_to_ptr.hbm [resolvable:$true] %s61_s23 }
   0xd   :  { %v46_v2 = vld [vmem:[#allocation5] sm:$0xff]  ;;  %v47_v3 = vld [vmem:[#allocation5 + $0x8] sm:$0xff]  ;;  %s59_s1 = sshll.u32 %s159_s0, 4  ;;  %s60_s1 = int_to_ptr.vmem [resolvable:$true] %s59_s1 }
   0xe   :  { %v48_v4 = vsub.f32 %v44_v0, %v46_v2  ;;  %v49_v5 = vsub.f32 %v45_v1, %v47_v3 }
  0x10   :  { %v50_v6 = vmul.f32 %v48_v4, %v48_v4  ;;  %v51_v7 = vmul.f32 %v49_v5, %v49_v5 }
  0x12   :  { %v52_v8 = vadd.f32 %v51_v7, %v50_v6 }
  0x14   :  { %53 = vst [vmem:[#allocation7] sm:$0xff] %v52_v8 }
  0x15   :  { %64 = dma.vmem_to_hbm [thread:$0]  %s60_s1, 128, %s62_s23, [#allocation4]  }
  0x16   :  { %153 = dma.done.wait [#allocation4], 128  }
  0x17   :  { %154 = vsyncadd [#allocation4], 4294967168 }
  0x18   :  { %69 = vsyncpa [#allocation3], 1 }
  0x19   :  { %70 = vsyncpa [#allocation6], 1 }
  0x1a   :  { %71 = vsyncpa [#allocation4], 1 }

</bundles_post_ra>
